<compile_context>
chip_gen: v5e
topology: v5e:2x2
jax: 0.10.0
libtpu: 0.0.40
codegen_flags: <defaults>
</compile_context>

<pallas_src>
import jax
import jax.numpy as jnp
from jax import lax
from jax.experimental import pallas as pl
from jax.experimental.pallas import tpu as pltpu


def _decoder_kernel(xl_ref, xr_ref, o_ref):
    # xl_ref: (TM, D) row tile, xr_ref: (TN|N, D) "column" operand in natural
    # layout. Contract the feature (last) dim of both -> (TM, TN) on the MXU,
    # no RHS transpose / XLU re-layout.
    s = lax.dot_general(
        xl_ref[...],
        xr_ref[...],
        dimension_numbers=(((1,), (1,)), ((), ())),
        preferred_element_type=jnp.float32,
    )
    # Elementwise sigmoid (EUP exp + VPU) fused with the store.
    o_ref[...] = jax.nn.sigmoid(s).astype(o_ref.dtype)


def _round_up(v, m):
    return ((v + m - 1) // m) * m


def _vmem_capacity_bytes():
    try:
        info = pltpu.get_tpu_info()
        cap = getattr(info, "vmem_capacity_bytes", None)
        if cap:
            return int(cap)
    except Exception:
        pass
    return 64 * 1024 * 1024  # conservative: v7x per-TC physical VMEM


def _choose_plan(N, D, in_bytes, out_bytes, budget):
    """Pick ('resident', TM, None) or ('tiled', TM, TN) under a VMEM budget."""
    n_rows8 = _round_up(N, 8)

    # Strategy A: whole x resident as the RHS (DMA'd once), 1-D grid over rows.
    rhs_resident = 2 * N * D * in_bytes  # conservatively count 2 buffers
    for tm in (512, 256, 128, 64, 32, 16, 8):
        tm_c = min(tm, n_rows8)
        lhs = 2 * tm_c * D * in_bytes
        out = 2 * tm_c * N * out_bytes + tm_c * N * 4  # out dbuf + f32 tile
        if lhs + rhs_resident + out <= budget:
            return "resident", tm_c, None

    # Strategy B: 2-D output tiling; maximize row tile (RHS re-fetch ~ 1/TM).
    for tm in (1024, 512, 256, 128, 64, 32, 16, 8):
        tm_c = min(tm, n_rows8)
        for tn in (512, 256, 128):
            tn_c = min(tn, N) if N < 128 else min(tn, _round_up(N, 128))
            lhs = 2 * tm_c * D * in_bytes
            rhs = 2 * tn_c * D * in_bytes
            out = 2 * tm_c * tn_c * out_bytes + tm_c * tn_c * 4
            if lhs + rhs + out <= budget:
                return "tiled", tm_c, tn_c
    # Last resort (huge D): minimal tiles; still correct.
    return "tiled", min(8, n_rows8), (N if N < 128 else 128)


def inner_product_decoder(
    x,
    dropout: float = 0.0,
    *,
    rng_key=None,
    compute_dtype=None,
    out_dtype=jnp.float32,
    row_tile=None,
):
    """sigmoid(dropout(x) @ dropout(x).T).reshape(-1) as a Pallas TPU kernel."""
    N, D = x.shape

    if dropout > 0.0:
        # PyTorch nn.Dropout (training): inverted dropout, scale kept by 1/(1-p).
        # Applied once in the wrapper so LHS/RHS see the same dropped hidden.
        # TODO(synk): could be fused in-kernel with pltpu.prng_*; it is an
        # O(N*D) elementwise pass, negligible next to the O(N^2*D) matmul.
        if rng_key is None:
            raise ValueError("dropout > 0 (training mode) requires rng_key.")
        keep = 1.0 - float(dropout)
        mask = jax.random.bernoulli(rng_key, keep, x.shape)
        x = jnp.where(mask, x / keep, jnp.zeros_like(x))

    if compute_dtype is not None and x.dtype != jnp.dtype(compute_dtype):
        x = x.astype(compute_dtype)  # e.g. bf16: halves DMA, native MXU rate

    in_bytes = x.dtype.itemsize
    out_bytes = jnp.dtype(out_dtype).itemsize

    cap = _vmem_capacity_bytes()
    budget = cap // 2
    vmem_limit = min(cap * 3 // 4, 128 * 1024 * 1024)

    plan, tm, tn = _choose_plan(N, D, in_bytes, out_bytes, budget)
    if row_tile is not None:  # test/tuning override
        tm = min(_round_up(int(row_tile), 8), _round_up(N, 8))

    cost = pl.CostEstimate(
        flops=2 * N * N * D,
        transcendentals=N * N,
        bytes_accessed=2 * N * D * in_bytes + N * N * out_bytes,
    )

    if plan == "resident":
        # 1-D grid over row stripes; full x stays resident as the RHS.
        out = pl.pallas_call(
            _decoder_kernel,
            out_shape=jax.ShapeDtypeStruct((N, N), out_dtype),
            grid=(pl.cdiv(N, tm),),
            in_specs=[
                pl.BlockSpec((tm, D), lambda i: (i, 0)),      # row tile
                pl.BlockSpec((N, D), lambda i: (0, 0)),       # resident RHS
            ],
            out_specs=pl.BlockSpec((tm, N), lambda i: (i, 0)),
            compiler_params=pltpu.CompilerParams(
                dimension_semantics=("parallel",),
                vmem_limit_bytes=vmem_limit,
            ),
            cost_estimate=cost,
        )(x, x)
    else:
        # 2-D output tiling; partial trailing blocks masked by Pallas (no pad).
        out = pl.pallas_call(
            _decoder_kernel,
            out_shape=jax.ShapeDtypeStruct((N, N), out_dtype),
            grid=(pl.cdiv(N, tm), pl.cdiv(N, tn)),
            in_specs=[
                pl.BlockSpec((tm, D), lambda i, j: (i, 0)),
                pl.BlockSpec((tn, D), lambda i, j: (j, 0)),
            ],
            out_specs=pl.BlockSpec((tm, tn), lambda i, j: (i, j)),
            compiler_params=pltpu.CompilerParams(
                dimension_semantics=("parallel", "parallel"),
                vmem_limit_bytes=vmem_limit,
            ),
            cost_estimate=cost,
        )(x, x)

    # TODO(synk): symmetry (out[i,j]=out[j,i]) halving of MXU work is skipped:
    # at these sizes the kernel is output-write bound, so it would not help.
    return out.reshape(-1)


def inner_product_decoder_ref(x):
    xf = x.astype(jnp.float32)
    return jax.nn.sigmoid(xf @ xf.T).reshape(-1)


if __name__ == "__main__":
    key = jax.random.PRNGKey(0)
    k1, k2 = jax.random.split(key)

    # Shapes implied by the module: x is (num_nodes, in_dim) node embeddings.
    N, IN_DIM = 8, 32
    x = jax.random.normal(k1, (N, IN_DIM), dtype=jnp.float32)

    out = jax.block_until_ready(inner_product_decoder(x))
    ref = inner_product_decoder_ref(x)
    assert out.shape == (N * N,), out.shape
    assert jnp.allclose(out, ref, atol=1e-5, rtol=1e-5), float(
        jnp.max(jnp.abs(out - ref))
    )

    # Non-multiple-of-tile N with a forced small row tile: exercises the
    # no-pad / partial-trailing-block path and a multi-step grid.
    N2, D2 = 136, 32
    x2 = jax.random.normal(k2, (N2, D2), dtype=jnp.float32)
    out2 = jax.block_until_ready(inner_product_decoder(x2, row_tile=64))
    ref2 = inner_product_decoder_ref(x2)
    assert out2.shape == (N2 * N2,), out2.shape
    assert jnp.allclose(out2, ref2, atol=1e-4, rtol=1e-4), float(
        jnp.max(jnp.abs(out2 - ref2))
    )

    # Optional bf16 compute path (halves DMA / native MXU rate) — looser tol.
    out_bf16 = jax.block_until_ready(
        inner_product_decoder(x, compute_dtype=jnp.bfloat16)
    )
    assert jnp.allclose(out_bf16, ref, atol=3e-2), float(
        jnp.max(jnp.abs(out_bf16 - ref))
    )

    print("KERNEL_OK")
</pallas_src>

<mosaic_0001>
module attributes {stable_mosaic.version = 11 : i64} {
  func.func @_decoder_kernel(%arg0: i32, %arg1: memref<8x32xf32, #tpu.memory_space<vmem>>, %arg2: memref<8x32xf32, #tpu.memory_space<vmem>>, %arg3: memref<8x8xf32, #tpu.memory_space<vmem>>) attributes {dimension_semantics = [#tpu.dimension_semantics<parallel>], iteration_bounds = array<i64: 1>, scalar_prefetch = 0 : i64, scratch_operands = 0 : i64, tpu.core_type = #tpu.core_type<tc>, window_params = [{transform_indices = @transform_0, window_bounds = array<i64: 8, 32>}, {pipeline_mode = #tpu.pipeline_mode<synchronous>, transform_indices = @transform_1, window_bounds = array<i64: 8, 32>}, {transform_indices = @transform_2, window_bounds = array<i64: 8, 8>}]} {
    %c0 = arith.constant 0 : index
    %c0_0 = arith.constant 0 : index
    %0 = vector.load %arg1[%c0, %c0_0] : memref<8x32xf32, #tpu.memory_space<vmem>>, vector<8x32xf32>
    %c0_1 = arith.constant 0 : index
    %c0_2 = arith.constant 0 : index
    %1 = vector.load %arg2[%c0_1, %c0_2] : memref<8x32xf32, #tpu.memory_space<vmem>>, vector<8x32xf32>
    %cst = arith.constant dense<0.000000e+00> : vector<8x8xf32>
    %2 = tpu.matmul %0, %1, %cst {dimension_numbers = #tpu.dot_dimension_numbers<[1], [1], [0], [0], [0, 0, 1, 0], [], []>} : vector<8x32xf32>, vector<8x32xf32>, vector<8x8xf32> -> vector<8x8xf32>
    %3 = arith.negf %2 : vector<8x8xf32>
    %4 = math.exp %3 : vector<8x8xf32>
    %cst_3 = arith.constant 1.000000e+00 : f32
    %5 = vector.broadcast %cst_3 : f32 to vector<8x8xf32>
    %6 = arith.addf %5, %4 : vector<8x8xf32>
    %7 = arith.divf %5, %6 : vector<8x8xf32>
    %c0_4 = arith.constant 0 : index
    %c0_5 = arith.constant 0 : index
    %8 = vector.load %arg3[%c0_4, %c0_5] : memref<8x8xf32, #tpu.memory_space<vmem>>, vector<8x8xf32>
    tpu.vector_store %arg3[%c0_4, %c0_5], %7 {strides = array<i32>} : memref<8x8xf32, #tpu.memory_space<vmem>>, vector<8x8xf32>,
    return
  }
  func.func @transform_0(%arg0: i32) -> (i32, i32) {
    %c0_i32 = arith.constant 0 : i32
    %c0_i32_0 = arith.constant 0 : i32
    return %arg0, %c0_i32 : i32, i32
  }
  func.func @transform_1(%arg0: i32) -> (i32, i32) {
    %c0_i32 = arith.constant 0 : i32
    %c0_i32_0 = arith.constant 0 : i32
    %c0_i32_1 = arith.constant 0 : i32
    return %c0_i32, %c0_i32_0 : i32, i32
  }
  func.func @transform_2(%arg0: i32) -> (i32, i32) {
    %c0_i32 = arith.constant 0 : i32
    %c0_i32_0 = arith.constant 0 : i32
    return %arg0, %c0_i32 : i32, i32
  }
}

</mosaic_0001>

<bundles_post_ra>
// kernel: tpu_custom_call.1
= control target key start
LH: loop header
LB: loop body
LE: loop exit
PB: predicated region body
PF: predicated region fallthrough
CT: control target
= control target key end

     0   :  { %7 = vsyncpa [#allocation3], 0  ;;  %s223_s0 = inlined_call_operand.hbm [shape: f32[8,32], index: 0, kind: input, shape index: {}]   ;;  %s224_s1 = inlined_call_operand.hbm [shape: f32[8,32], index: 1, kind: input, shape index: {}]   ;;  %s225_s2 = inlined_call_operand.hbm [shape: f32[8,8], index: 2, kind: output, shape index: {}]  }
   0x1   :  { %8 = vsyncpa [#allocation6], 0 }
   0x2   :  { %9 = vsyncpa [#allocation4], 0  ;;  %s15_s11 = sshll.u32 %s223_s0, 4  ;;  %s196_s12 = smov [#allocation2]   ;;  %s16_s11 = int_to_ptr.hbm [resolvable:$true] %s15_s11 }
   0x3   :  { %s17_s13 = sshll.u32 %s196_s12, 4  ;;  %s26_s16 = sshll.u32 %s224_s1, 4  ;;  %s18_s13 = int_to_ptr.vmem [resolvable:$true] %s17_s13  ;;  %s27_s16 = int_to_ptr.hbm [resolvable:$true] %s26_s16 }
   0x4   :  { %20 = dma.hbm_to_vmem [thread:$0]  %s16_s11, 128, %s18_s13, [#allocation3]  }
   0x5   :  { %s197_s17 = smov [#allocation5]  }
   0x6   :  { %s28_s18 = sshll.u32 %s197_s17, 4  ;;  %s29_s18 = int_to_ptr.vmem [resolvable:$true] %s28_s18 }
   0x7   :  { %31 = dma.hbm_to_vmem [thread:$0]  %s27_s16, 128, %s29_s18, [#allocation6]  }
   0x8   :  { %190 = dma.done.wait [#allocation3], 128  }
   0x9   :  { %191 = vsyncadd [#allocation3], 4294967168 }
   0xa   :  { %192 = dma.done.wait [#allocation6], 128  }
   0xb   :  { %193 = vsyncadd [#allocation6], 4294967168  ;;  %vm42_vm0 = vcmask 261120   ;;  %v41_v0 = vld [vmem:[#allocation5] sm:$0xff]  ;;  %v40_v1 = vld [vmem:[#allocation2] sm:$0xff]  ;;  %s198_s0 = smov [#allocation7]  }
   0xc   :  { %108 = vmatpush.xpose.msk.msra.mxu0 %vm42_vm0, %v41_v0  ;;  %s95_s1 = sshll.u32 %s198_s0, 4  ;;  %s97_s21 = sshll.u32 %s225_s2, 4  ;;  %vm88_vm4 = vcmask 64512   ;;  %s96_s1 = int_to_ptr.vmem [resolvable:$true] %s95_s1  ;;  %s98_s21 = int_to_ptr.hbm [resolvable:$true] %s97_s21 }
   0xf   :  { %109 = vmatmul.msk.f32.vlgmr.msra.gmra.mxu0 %vm42_vm0, %v40_v1 }
  0x8c   :  { %v66_v2 = vpop.f32.mrf.mxu0 }
  0x8d   :  { %v110_v3 = vmul.f32 -1.442695, %v66_v2 }
  0x8f   :  { %114 = vpow2.f32 %v110_v3 }
  0x95   :  { %v115_v4 = vpop.eup %114 }
  0x96   :  { %v72_v5 = vadd.f32 1.0, %v115_v4 }
  0x98   :  { %116 = vrcp.f32 %v72_v5  ;;  %v84_v9 = vand.u32 2147483648, %v72_v5  ;;  %v82_v11 = vand.u32 2147483647, %v72_v5  ;;  %vm78_vm2 = vweird.f32 %v72_v5 }
  0x9a   :  { %v85_v13 = vor.u32 1.1754944e-38, %v84_v9  ;;  %vm83_vm5 = vcmp.eq.f32.partialorder %v82_v11, 8.507059e+37 }
  0x9e   :  { %v117_v6 = vpop.eup %116 }
  0x9f   :  { %v74_v7 = vmul.f32 %v117_v6, %v72_v5  ;;  %vm79_vm1 = vweird.f32 %v117_v6 }
  0xa0   :  { %vm80_vm3 = vmor %vm78_vm2, %vm79_vm1 }
  0xa1   :  { %v75_v8 = vsub.f32 1.0, %v74_v7 }
  0xa3   :  { %v76_v10 = vmul.f32 %v117_v6, %v75_v8 }
  0xa5   :  { %v77_v12 = vadd.f32 %v117_v6, %v76_v10 }
  0xa7   :  { %v81_v14 = vsel %vm80_vm3, %v117_v6, %v77_v12 }
  0xa8   :  { %v86_v15 = vsel %vm83_vm5, %v85_v13, %v81_v14 }
  0xa9   :  { %89 = vst.msk [vmem:[#allocation7] sm:$0xff] %vm88_vm4, %v86_v15 }
  0xaa   :  { %100 = dma.vmem_to_hbm [thread:$0]  %s96_s1, 128, %s98_s21, [#allocation4]  }
  0xab   :  { %194 = dma.done.wait [#allocation4], 128  }
  0xac   :  { %195 = vsyncadd [#allocation4], 4294967168 }
  0xad   :  { %105 = vsyncpa [#allocation3], 1 }
  0xae   :  { %106 = vsyncpa [#allocation6], 1 }
  0xaf   :  { %107 = vsyncpa [#allocation4], 1 }

</bundles_post_ra>
